<compile_context>
chip_gen: v5e
topology: v5e:2x2
jax: 0.10.0
libtpu: 0.0.40
codegen_flags: <defaults>
</compile_context>

<pallas_src>
import functools

import jax
import jax.numpy as jnp
from jax import lax
from jax.experimental import pallas as pl
from jax.experimental.pallas import tpu as pltpu

LANE = 128        # table / output last dim padded to a full lane width
B_TILE = 8        # batch rows per grid step -> (8, 128) sublane/lane-dense output tile

# If the double-buffered f32 table would exceed this, store it as bf16 and upcast
# to f32 at the accumulate (halves VMEM footprint; matters on v7x's 64 MiB VMEM).
_F32_TABLE_BUDGET = 24 << 20


def _gather_sum_kernel(ids_ref, table_ref, out_ref, *, seq_len, b_tile):
    """out[b] = sum_s table[ids[b, s]] for one tile of b_tile batch rows.

    ids_ref  : SMEM (batch_pad*seq_len,) int32, batch-major flat (scalar prefetch).
    table_ref: VMEM (vocab, width) f32/bf16 -- full table, resident (constant index_map).
    out_ref  : VMEM (b_tile, width) f32.
    """
    bt = pl.program_id(0)
    base = bt * (b_tile * seq_len)
    width = out_ref.shape[-1]

    for b in range(b_tile):                        # static unroll over the batch tile
        row_base = base + b * seq_len

        def body(s, acc, row_base=row_base):
            tok = ids_ref[row_base + s]            # SMEM scalar read
            # one dynamic-row vector load from the VMEM-resident table; f32 accumulate
            return acc + table_ref[pl.ds(tok, 1), :].astype(jnp.float32)

        acc = lax.fori_loop(0, seq_len, body,
                            jnp.zeros((1, width), jnp.float32),
                            unroll=min(8, seq_len))
        out_ref[pl.ds(b, 1), :] = acc


def make_wordavg_params(embed_table, linear_w, linear_b):
    """One-time weight precompute -- hoisted out of the per-call forward.

    Picks the narrower gather width (min(emb_pad, out_pad)):
      * out_pad <= emb_pad: gather rows of P = embed @ W^T  (epilogue: /seq_len + bias)
      * emb_pad <  out_pad: gather raw embedding rows       (epilogue: /seq_len @ W^T + bias)
    1/seq_len is NOT folded into the table, so it stays valid across sequence lengths.
    """
    vocab, emb = embed_table.shape
    out_size = linear_w.shape[0]
    emb_pad = pl.cdiv(emb, LANE) * LANE
    out_pad = pl.cdiv(out_size, LANE) * LANE
    use_proj = out_pad <= emb_pad

    if use_proj:
        tbl = embed_table.astype(jnp.float32) @ linear_w.astype(jnp.float32).T
        tbl = jnp.pad(tbl, ((0, 0), (0, out_pad - out_size)))
    else:
        tbl = jnp.pad(embed_table.astype(jnp.float32), ((0, 0), (0, emb_pad - emb)))

    table_dtype = (jnp.float32
                   if 2 * tbl.size * 4 <= _F32_TABLE_BUDGET else jnp.bfloat16)
    # TODO(synk): for vocab so large that even the bf16 table misses VMEM (v7x: 64 MiB/TC),
    # fall back to an HBM-resident table with a per-token DMA gather pipeline.
    return dict(table=tbl.astype(table_dtype),
                use_proj=use_proj,
                linear_w=linear_w.astype(jnp.float32),
                linear_b=linear_b.astype(jnp.float32))


@functools.partial(jax.jit, static_argnames=("use_proj",))
def word_avg_forward(text, table, linear_w, linear_b, *, use_proj):
    """text: (seq_len, batch) int token ids. Returns (batch, output_size) f32."""
    seq_len, batch = text.shape
    vocab, width = table.shape
    out_size, emb = linear_w.shape

    # Token ids, batch-major, padded to a multiple of B_TILE rows, flattened to 1D
    # (1D SMEM avoids the 2D last-dim-padded-to-128 blowup). Padded rows use token 0
    # (a valid index; their results are sliced away below).
    batch_pad = pl.cdiv(batch, B_TILE) * B_TILE
    ids = jnp.zeros((batch_pad, seq_len), jnp.int32)
    ids = ids.at[:batch].set(text.T.astype(jnp.int32))
    ids_flat = ids.reshape(-1)

    table_bytes = table.size * table.dtype.itemsize
    kernel = functools.partial(_gather_sum_kernel, seq_len=seq_len, b_tile=B_TILE)

    sums = pl.pallas_call(
        kernel,
        out_shape=jax.ShapeDtypeStruct((batch_pad, width), jnp.float32),
        grid_spec=pltpu.PrefetchScalarGridSpec(
            num_scalar_prefetch=1,
            grid=(batch_pad // B_TILE,),
            in_specs=[
                # Full table, constant block index -> DMA'd once, stays VMEM-resident.
                pl.BlockSpec((vocab, width), lambda bt, ids_sm: (0, 0)),
            ],
            out_specs=pl.BlockSpec((B_TILE, width), lambda bt, ids_sm: (bt, 0)),
        ),
        compiler_params=pltpu.CompilerParams(
            # Batch-tile axis is embarrassingly parallel (v7x: split over its 2 TCs;
            # the resident table is then duplicated per core -- accounted in the budget).
            dimension_semantics=("parallel",),
            vmem_limit_bytes=int(min(100 << 20,
                                     max(16 << 20, 2 * table_bytes + (4 << 20)))),
        ),
    )(ids_flat, table)

    pooled = sums[:batch] * (1.0 / seq_len)          # mean over the sequence (epilogue)
    if use_proj:
        return pooled[:, :out_size] + linear_b       # table was embed @ W^T
    return pooled[:, :emb] @ linear_w.T + linear_b   # table was raw embedding rows


if __name__ == "__main__":
    # Small shapes consistent with the module.
    vocab_size = 50
    embedding_size = 32
    output_size = 8
    pad_idx = 0
    seq_len = 8
    batch = 2

    key = jax.random.PRNGKey(0)
    k_emb, k_w, k_b, k_txt = jax.random.split(key, 4)

    # nn.Embedding ~ N(0,1) with the padding row zeroed;
    # nn.Linear ~ U(-1/sqrt(in), 1/sqrt(in)).
    embed_table = jax.random.normal(k_emb, (vocab_size, embedding_size), jnp.float32)
    embed_table = embed_table.at[pad_idx].set(0.0)
    bound = 1.0 / (embedding_size ** 0.5)
    linear_w = jax.random.uniform(k_w, (output_size, embedding_size), jnp.float32,
                                  minval=-bound, maxval=bound)
    linear_b = jax.random.uniform(k_b, (output_size,), jnp.float32,
                                  minval=-bound, maxval=bound)

    # text: (seq_len, batch) token ids (PyTorch default seq-first layout).
    text = jax.random.randint(k_txt, (seq_len, batch), 0, vocab_size, jnp.int32)

    # One-time precompute (hoisted out of the per-call jitted forward).
    params = make_wordavg_params(embed_table, linear_w, linear_b)

    out = word_avg_forward(text, params["table"], params["linear_w"],
                           params["linear_b"], use_proj=params["use_proj"])
    out = jax.block_until_ready(out)

    # Plain-JAX reference of the PyTorch forward.
    ref = (jnp.mean(jnp.transpose(embed_table[text], (1, 0, 2)), axis=1)
           @ linear_w.T + linear_b)
    assert out.shape == (batch, output_size), out.shape
    assert jnp.allclose(out, ref, atol=1e-4, rtol=1e-4), (out, ref)

    print("KERNEL_OK")
</pallas_src>

<mosaic_0001>
module attributes {stable_mosaic.version = 11 : i64} {
  func.func @_gather_sum_kernel(%arg0: i32, %arg1: memref<64xi32, #tpu.memory_space<smem>>, %arg2: memref<50x128xf32, #tpu.memory_space<vmem>>, %arg3: memref<8x128xf32, #tpu.memory_space<vmem>>) attributes {dimension_semantics = [#tpu.dimension_semantics<parallel>], iteration_bounds = array<i64: 1>, scalar_prefetch = 1 : i64, scratch_operands = 0 : i64, tpu.core_type = #tpu.core_type<tc>, window_params = [{pipeline_mode = #tpu.pipeline_mode<synchronous>, transform_indices = @transform_0, window_bounds = array<i64: 50, 128>}, {transform_indices = @transform_1, window_bounds = array<i64: 8, 128>}]} {
    %c64_i32 = arith.constant 64 : i32
    %0 = arith.muli %arg0, %c64_i32 : i32
    %c0_i32 = arith.constant 0 : i32
    %1 = arith.addi %0, %c0_i32 : i32
    %cst = arith.constant 0.000000e+00 : f32
    %2 = vector.broadcast %cst : f32 to vector<1x128xf32>
    %c0_i32_0 = arith.constant 0 : i32
    %3 = arith.addi %1, %c0_i32_0 : i32
    %4 = arith.index_cast %3 : i32 to index
    %5 = memref.load %arg1[%4] : memref<64xi32, #tpu.memory_space<smem>>
    %6 = arith.index_cast %5 : i32 to index
    %c0 = arith.constant 0 : index
    %7 = vector.load %arg2[%6, %c0] : memref<50x128xf32, #tpu.memory_space<vmem>>, vector<1x128xf32>
    %8 = arith.addf %2, %7 : vector<1x128xf32>
    %c1_i32 = arith.constant 1 : i32
    %9 = arith.addi %1, %c1_i32 : i32
    %10 = arith.index_cast %9 : i32 to index
    %11 = memref.load %arg1[%10] : memref<64xi32, #tpu.memory_space<smem>>
    %12 = arith.index_cast %11 : i32 to index
    %c0_1 = arith.constant 0 : index
    %13 = vector.load %arg2[%12, %c0_1] : memref<50x128xf32, #tpu.memory_space<vmem>>, vector<1x128xf32>
    %14 = arith.addf %8, %13 : vector<1x128xf32>
    %c2_i32 = arith.constant 2 : i32
    %15 = arith.addi %1, %c2_i32 : i32
    %16 = arith.index_cast %15 : i32 to index
    %17 = memref.load %arg1[%16] : memref<64xi32, #tpu.memory_space<smem>>
    %18 = arith.index_cast %17 : i32 to index
    %c0_2 = arith.constant 0 : index
    %19 = vector.load %arg2[%18, %c0_2] : memref<50x128xf32, #tpu.memory_space<vmem>>, vector<1x128xf32>
    %20 = arith.addf %14, %19 : vector<1x128xf32>
    %c3_i32 = arith.constant 3 : i32
    %21 = arith.addi %1, %c3_i32 : i32
    %22 = arith.index_cast %21 : i32 to index
    %23 = memref.load %arg1[%22] : memref<64xi32, #tpu.memory_space<smem>>
    %24 = arith.index_cast %23 : i32 to index
    %c0_3 = arith.constant 0 : index
    %25 = vector.load %arg2[%24, %c0_3] : memref<50x128xf32, #tpu.memory_space<vmem>>, vector<1x128xf32>
    %26 = arith.addf %20, %25 : vector<1x128xf32>
    %c4_i32 = arith.constant 4 : i32
    %27 = arith.addi %1, %c4_i32 : i32
    %28 = arith.index_cast %27 : i32 to index
    %29 = memref.load %arg1[%28] : memref<64xi32, #tpu.memory_space<smem>>
    %30 = arith.index_cast %29 : i32 to index
    %c0_4 = arith.constant 0 : index
    %31 = vector.load %arg2[%30, %c0_4] : memref<50x128xf32, #tpu.memory_space<vmem>>, vector<1x128xf32>
    %32 = arith.addf %26, %31 : vector<1x128xf32>
    %c5_i32 = arith.constant 5 : i32
    %33 = arith.addi %1, %c5_i32 : i32
    %34 = arith.index_cast %33 : i32 to index
    %35 = memref.load %arg1[%34] : memref<64xi32, #tpu.memory_space<smem>>
    %36 = arith.index_cast %35 : i32 to index
    %c0_5 = arith.constant 0 : index
    %37 = vector.load %arg2[%36, %c0_5] : memref<50x128xf32, #tpu.memory_space<vmem>>, vector<1x128xf32>
    %38 = arith.addf %32, %37 : vector<1x128xf32>
    %c6_i32 = arith.constant 6 : i32
    %39 = arith.addi %1, %c6_i32 : i32
    %40 = arith.index_cast %39 : i32 to index
    %41 = memref.load %arg1[%40] : memref<64xi32, #tpu.memory_space<smem>>
    %42 = arith.index_cast %41 : i32 to index
    %c0_6 = arith.constant 0 : index
    %43 = vector.load %arg2[%42, %c0_6] : memref<50x128xf32, #tpu.memory_space<vmem>>, vector<1x128xf32>
    %44 = arith.addf %38, %43 : vector<1x128xf32>
    %c7_i32 = arith.constant 7 : i32
    %45 = arith.addi %1, %c7_i32 : i32
    %46 = arith.index_cast %45 : i32 to index
    %47 = memref.load %arg1[%46] : memref<64xi32, #tpu.memory_space<smem>>
    %48 = arith.index_cast %47 : i32 to index
    %c0_7 = arith.constant 0 : index
    %49 = vector.load %arg2[%48, %c0_7] : memref<50x128xf32, #tpu.memory_space<vmem>>, vector<1x128xf32>
    %50 = arith.addf %44, %49 : vector<1x128xf32>
    %c8_i32 = arith.constant 8 : i32
    %c0_8 = arith.constant 0 : index
    %c0_9 = arith.constant 0 : index
    %51 = vector.load %arg3[%c0_8, %c0_9] : memref<8x128xf32, #tpu.memory_space<vmem>>, vector<1x128xf32>
    tpu.vector_store %arg3[%c0_8, %c0_9], %50 {strides = array<i32>} : memref<8x128xf32, #tpu.memory_space<vmem>>, vector<1x128xf32>,
    %c8_i32_10 = arith.constant 8 : i32
    %52 = arith.addi %0, %c8_i32_10 : i32
    %cst_11 = arith.constant 0.000000e+00 : f32
    %53 = vector.broadcast %cst_11 : f32 to vector<1x128xf32>
    %c0_i32_12 = arith.constant 0 : i32
    %54 = arith.addi %52, %c0_i32_12 : i32
    %55 = arith.index_cast %54 : i32 to index
    %56 = memref.load %arg1[%55] : memref<64xi32, #tpu.memory_space<smem>>
    %57 = arith.index_cast %56 : i32 to index
    %c0_13 = arith.constant 0 : index
    %58 = vector.load %arg2[%57, %c0_13] : memref<50x128xf32, #tpu.memory_space<vmem>>, vector<1x128xf32>
    %59 = arith.addf %53, %58 : vector<1x128xf32>
    %c1_i32_14 = arith.constant 1 : i32
    %60 = arith.addi %52, %c1_i32_14 : i32
    %61 = arith.index_cast %60 : i32 to index
    %62 = memref.load %arg1[%61] : memref<64xi32, #tpu.memory_space<smem>>
    %63 = arith.index_cast %62 : i32 to index
    %c0_15 = arith.constant 0 : index
    %64 = vector.load %arg2[%63, %c0_15] : memref<50x128xf32, #tpu.memory_space<vmem>>, vector<1x128xf32>
    %65 = arith.addf %59, %64 : vector<1x128xf32>
    %c2_i32_16 = arith.constant 2 : i32
    %66 = arith.addi %52, %c2_i32_16 : i32
    %67 = arith.index_cast %66 : i32 to index
    %68 = memref.load %arg1[%67] : memref<64xi32, #tpu.memory_space<smem>>
    %69 = arith.index_cast %68 : i32 to index
    %c0_17 = arith.constant 0 : index
    %70 = vector.load %arg2[%69, %c0_17] : memref<50x128xf32, #tpu.memory_space<vmem>>, vector<1x128xf32>
    %71 = arith.addf %65, %70 : vector<1x128xf32>
    %c3_i32_18 = arith.constant 3 : i32
    %72 = arith.addi %52, %c3_i32_18 : i32
    %73 = arith.index_cast %72 : i32 to index
    %74 = memref.load %arg1[%73] : memref<64xi32, #tpu.memory_space<smem>>
    %75 = arith.index_cast %74 : i32 to index
    %c0_19 = arith.constant 0 : index
    %76 = vector.load %arg2[%75, %c0_19] : memref<50x128xf32, #tpu.memory_space<vmem>>, vector<1x128xf32>
    %77 = arith.addf %71, %76 : vector<1x128xf32>
    %c4_i32_20 = arith.constant 4 : i32
    %78 = arith.addi %52, %c4_i32_20 : i32
    %79 = arith.index_cast %78 : i32 to index
    %80 = memref.load %arg1[%79] : memref<64xi32, #tpu.memory_space<smem>>
    %81 = arith.index_cast %80 : i32 to index
    %c0_21 = arith.constant 0 : index
    %82 = vector.load %arg2[%81, %c0_21] : memref<50x128xf32, #tpu.memory_space<vmem>>, vector<1x128xf32>
    %83 = arith.addf %77, %82 : vector<1x128xf32>
    %c5_i32_22 = arith.constant 5 : i32
    %84 = arith.addi %52, %c5_i32_22 : i32
    %85 = arith.index_cast %84 : i32 to index
    %86 = memref.load %arg1[%85] : memref<64xi32, #tpu.memory_space<smem>>
    %87 = arith.index_cast %86 : i32 to index
    %c0_23 = arith.constant 0 : index
    %88 = vector.load %arg2[%87, %c0_23] : memref<50x128xf32, #tpu.memory_space<vmem>>, vector<1x128xf32>
    %89 = arith.addf %83, %88 : vector<1x128xf32>
    %c6_i32_24 = arith.constant 6 : i32
    %90 = arith.addi %52, %c6_i32_24 : i32
    %91 = arith.index_cast %90 : i32 to index
    %92 = memref.load %arg1[%91] : memref<64xi32, #tpu.memory_space<smem>>
    %93 = arith.index_cast %92 : i32 to index
    %c0_25 = arith.constant 0 : index
    %94 = vector.load %arg2[%93, %c0_25] : memref<50x128xf32, #tpu.memory_space<vmem>>, vector<1x128xf32>
    %95 = arith.addf %89, %94 : vector<1x128xf32>
    %c7_i32_26 = arith.constant 7 : i32
    %96 = arith.addi %52, %c7_i32_26 : i32
    %97 = arith.index_cast %96 : i32 to index
    %98 = memref.load %arg1[%97] : memref<64xi32, #tpu.memory_space<smem>>
    %99 = arith.index_cast %98 : i32 to index
    %c0_27 = arith.constant 0 : index
    %100 = vector.load %arg2[%99, %c0_27] : memref<50x128xf32, #tpu.memory_space<vmem>>, vector<1x128xf32>
    %101 = arith.addf %95, %100 : vector<1x128xf32>
    %c8_i32_28 = arith.constant 8 : i32
    %c1 = arith.constant 1 : index
    %c0_29 = arith.constant 0 : index
    %102 = vector.load %arg3[%c1, %c0_29] : memref<8x128xf32, #tpu.memory_space<vmem>>, vector<1x128xf32>
    tpu.vector_store %arg3[%c1, %c0_29], %101 {strides = array<i32>} : memref<8x128xf32, #tpu.memory_space<vmem>>, vector<1x128xf32>,
    %c16_i32 = arith.constant 16 : i32
    %103 = arith.addi %0, %c16_i32 : i32
    %cst_30 = arith.constant 0.000000e+00 : f32
    %104 = vector.broadcast %cst_30 : f32 to vector<1x128xf32>
    %c0_i32_31 = arith.constant 0 : i32
    %105 = arith.addi %103, %c0_i32_31 : i32
    %106 = arith.index_cast %105 : i32 to index
    %107 = memref.load %arg1[%106] : memref<64xi32, #tpu.memory_space<smem>>
    %108 = arith.index_cast %107 : i32 to index
    %c0_32 = arith.constant 0 : index
    %109 = vector.load %arg2[%108, %c0_32] : memref<50x128xf32, #tpu.memory_space<vmem>>, vector<1x128xf32>
    %110 = arith.addf %104, %109 : vector<1x128xf32>
    %c1_i32_33 = arith.constant 1 : i32
    %111 = arith.addi %103, %c1_i32_33 : i32
    %112 = arith.index_cast %111 : i32 to index
    %113 = memref.load %arg1[%112] : memref<64xi32, #tpu.memory_space<smem>>
    %114 = arith.index_cast %113 : i32 to index
    %c0_34 = arith.constant 0 : index
    %115 = vector.load %arg2[%114, %c0_34] : memref<50x128xf32, #tpu.memory_space<vmem>>, vector<1x128xf32>
    %116 = arith.addf %110, %115 : vector<1x128xf32>
    %c2_i32_35 = arith.constant 2 : i32
    %117 = arith.addi %103, %c2_i32_35 : i32
    %118 = arith.index_cast %117 : i32 to index
    %119 = memref.load %arg1[%118] : memref<64xi32, #tpu.memory_space<smem>>
    %120 = arith.index_cast %119 : i32 to index
    %c0_36 = arith.constant 0 : index
    %121 = vector.load %arg2[%120, %c0_36] : memref<50x128xf32, #tpu.memory_space<vmem>>, vector<1x128xf32>
    %122 = arith.addf %116, %121 : vector<1x128xf32>
    %c3_i32_37 = arith.constant 3 : i32
    %123 = arith.addi %103, %c3_i32_37 : i32
    %124 = arith.index_cast %123 : i32 to index
    %125 = memref.load %arg1[%124] : memref<64xi32, #tpu.memory_space<smem>>
    %126 = arith.index_cast %125 : i32 to index
    %c0_38 = arith.constant 0 : index
    %127 = vector.load %arg2[%126, %c0_38] : memref<50x128xf32, #tpu.memory_space<vmem>>, vector<1x128xf32>
    %128 = arith.addf %122, %127 : vector<1x128xf32>
    %c4_i32_39 = arith.constant 4 : i32
    %129 = arith.addi %103, %c4_i32_39 : i32
    %130 = arith.index_cast %129 : i32 to index
    %131 = memref.load %arg1[%130] : memref<64xi32, #tpu.memory_space<smem>>
    %132 = arith.index_cast %131 : i32 to index
    %c0_40 = arith.constant 0 : index
    %133 = vector.load %arg2[%132, %c0_40] : memref<50x128xf32, #tpu.memory_space<vmem>>, vector<1x128xf32>
    %134 = arith.addf %128, %133 : vector<1x128xf32>
    %c5_i32_41 = arith.constant 5 : i32
    %135 = arith.addi %103, %c5_i32_41 : i32
    %136 = arith.index_cast %135 : i32 to index
    %137 = memref.load %arg1[%136] : memref<64xi32, #tpu.memory_space<smem>>
    %138 = arith.index_cast %137 : i32 to index
    %c0_42 = arith.constant 0 : index
    %139 = vector.load %arg2[%138, %c0_42] : memref<50x128xf32, #tpu.memory_space<vmem>>, vector<1x128xf32>
    %140 = arith.addf %134, %139 : vector<1x128xf32>
    %c6_i32_43 = arith.constant 6 : i32
    %141 = arith.addi %103, %c6_i32_43 : i32
    %142 = arith.index_cast %141 : i32 to index
    %143 = memref.load %arg1[%142] : memref<64xi32, #tpu.memory_space<smem>>
    %144 = arith.index_cast %143 : i32 to index
    %c0_44 = arith.constant 0 : index
    %145 = vector.load %arg2[%144, %c0_44] : memref<50x128xf32, #tpu.memory_space<vmem>>, vector<1x128xf32>
    %146 = arith.addf %140, %145 : vector<1x128xf32>
    %c7_i32_45 = arith.constant 7 : i32
    %147 = arith.addi %103, %c7_i32_45 : i32
    %148 = arith.index_cast %147 : i32 to index
    %149 = memref.load %arg1[%148] : memref<64xi32, #tpu.memory_space<smem>>
    %150 = arith.index_cast %149 : i32 to index
    %c0_46 = arith.constant 0 : index
    %151 = vector.load %arg2[%150, %c0_46] : memref<50x128xf32, #tpu.memory_space<vmem>>, vector<1x128xf32>
    %152 = arith.addf %146, %151 : vector<1x128xf32>
    %c8_i32_47 = arith.constant 8 : i32
    %c2 = arith.constant 2 : index
    %c0_48 = arith.constant 0 : index
    %153 = vector.load %arg3[%c2, %c0_48] : memref<8x128xf32, #tpu.memory_space<vmem>>, vector<1x128xf32>
    tpu.vector_store %arg3[%c2, %c0_48], %152 {strides = array<i32>} : memref<8x128xf32, #tpu.memory_space<vmem>>, vector<1x128xf32>,
    %c24_i32 = arith.constant 24 : i32
    %154 = arith.addi %0, %c24_i32 : i32
    %cst_49 = arith.constant 0.000000e+00 : f32
    %155 = vector.broadcast %cst_49 : f32 to vector<1x128xf32>
    %c0_i32_50 = arith.constant 0 : i32
    %156 = arith.addi %154, %c0_i32_50 : i32
    %157 = arith.index_cast %156 : i32 to index
    %158 = memref.load %arg1[%157] : memref<64xi32, #tpu.memory_space<smem>>
    %159 = arith.index_cast %158 : i32 to index
    %c0_51 = arith.constant 0 : index
    %160 = vector.load %arg2[%159, %c0_51] : memref<50x128xf32, #tpu.memory_space<vmem>>, vector<1x128xf32>
    %161 = arith.addf %155, %160 : vector<1x128xf32>
    %c1_i32_52 = arith.constant 1 : i32
    %162 = arith.addi %154, %c1_i32_52 : i32
    %163 = arith.index_cast %162 : i32 to index
    %164 = memref.load %arg1[%163] : memref<64xi32, #tpu.memory_space<smem>>
    %165 = arith.index_cast %164 : i32 to index
    %c0_53 = arith.constant 0 : index
    %166 = vector.load %arg2[%165, %c0_53] : memref<50x128xf32, #tpu.memory_space<vmem>>, vector<1x128xf32>
    %167 = arith.addf %161, %166 : vector<1x128xf32>
    %c2_i32_54 = arith.constant 2 : i32
    %168 = arith.addi %154, %c2_i32_54 : i32
    %169 = arith.index_cast %168 : i32 to index
    %170 = memref.load %arg1[%169] : memref<64xi32, #tpu.memory_space<smem>>
    %171 = arith.index_cast %170 : i32 to index
    %c0_55 = arith.constant 0 : index
    %172 = vector.load %arg2[%171, %c0_55] : memref<50x128xf32, #tpu.memory_space<vmem>>, vector<1x128xf32>
    %173 = arith.addf %167, %172 : vector<1x128xf32>
    %c3_i32_56 = arith.constant 3 : i32
    %174 = arith.addi %154, %c3_i32_56 : i32
    %175 = arith.index_cast %174 : i32 to index
    %176 = memref.load %arg1[%175] : memref<64xi32, #tpu.memory_space<smem>>
    %177 = arith.index_cast %176 : i32 to index
    %c0_57 = arith.constant 0 : index
    %178 = vector.load %arg2[%177, %c0_57] : memref<50x128xf32, #tpu.memory_space<vmem>>, vector<1x128xf32>
    %179 = arith.addf %173, %178 : vector<1x128xf32>
    %c4_i32_58 = arith.constant 4 : i32
    %180 = arith.addi %154, %c4_i32_58 : i32
    %181 = arith.index_cast %180 : i32 to index
    %182 = memref.load %arg1[%181] : memref<64xi32, #tpu.memory_space<smem>>
    %183 = arith.index_cast %182 : i32 to index
    %c0_59 = arith.constant 0 : index
    %184 = vector.load %arg2[%183, %c0_59] : memref<50x128xf32, #tpu.memory_space<vmem>>, vector<1x128xf32>
    %185 = arith.addf %179, %184 : vector<1x128xf32>
    %c5_i32_60 = arith.constant 5 : i32
    %186 = arith.addi %154, %c5_i32_60 : i32
    %187 = arith.index_cast %186 : i32 to index
    %188 = memref.load %arg1[%187] : memref<64xi32, #tpu.memory_space<smem>>
    %189 = arith.index_cast %188 : i32 to index
    %c0_61 = arith.constant 0 : index
    %190 = vector.load %arg2[%189, %c0_61] : memref<50x128xf32, #tpu.memory_space<vmem>>, vector<1x128xf32>
    %191 = arith.addf %185, %190 : vector<1x128xf32>
    %c6_i32_62 = arith.constant 6 : i32
    %192 = arith.addi %154, %c6_i32_62 : i32
    %193 = arith.index_cast %192 : i32 to index
    %194 = memref.load %arg1[%193] : memref<64xi32, #tpu.memory_space<smem>>
    %195 = arith.index_cast %194 : i32 to index
    %c0_63 = arith.constant 0 : index
    %196 = vector.load %arg2[%195, %c0_63] : memref<50x128xf32, #tpu.memory_space<vmem>>, vector<1x128xf32>
    %197 = arith.addf %191, %196 : vector<1x128xf32>
    %c7_i32_64 = arith.constant 7 : i32
    %198 = arith.addi %154, %c7_i32_64 : i32
    %199 = arith.index_cast %198 : i32 to index
    %200 = memref.load %arg1[%199] : memref<64xi32, #tpu.memory_space<smem>>
    %201 = arith.index_cast %200 : i32 to index
    %c0_65 = arith.constant 0 : index
    %202 = vector.load %arg2[%201, %c0_65] : memref<50x128xf32, #tpu.memory_space<vmem>>, vector<1x128xf32>
    %203 = arith.addf %197, %202 : vector<1x128xf32>
    %c8_i32_66 = arith.constant 8 : i32
    %c3 = arith.constant 3 : index
    %c0_67 = arith.constant 0 : index
    %204 = vector.load %arg3[%c3, %c0_67] : memref<8x128xf32, #tpu.memory_space<vmem>>, vector<1x128xf32>
    tpu.vector_store %arg3[%c3, %c0_67], %203 {strides = array<i32>} : memref<8x128xf32, #tpu.memory_space<vmem>>, vector<1x128xf32>,
    %c32_i32 = arith.constant 32 : i32
    %205 = arith.addi %0, %c32_i32 : i32
    %cst_68 = arith.constant 0.000000e+00 : f32
    %206 = vector.broadcast %cst_68 : f32 to vector<1x128xf32>
    %c0_i32_69 = arith.constant 0 : i32
    %207 = arith.addi %205, %c0_i32_69 : i32
    %208 = arith.index_cast %207 : i32 to index
    %209 = memref.load %arg1[%208] : memref<64xi32, #tpu.memory_space<smem>>
    %210 = arith.index_cast %209 : i32 to index
    %c0_70 = arith.constant 0 : index
    %211 = vector.load %arg2[%210, %c0_70] : memref<50x128xf32, #tpu.memory_space<vmem>>, vector<1x128xf32>
    %212 = arith.addf %206, %211 : vector<1x128xf32>
    %c1_i32_71 = arith.constant 1 : i32
    %213 = arith.addi %205, %c1_i32_71 : i32
    %214 = arith.index_cast %213 : i32 to index
    %215 = memref.load %arg1[%214] : memref<64xi32, #tpu.memory_space<smem>>
    %216 = arith.index_cast %215 : i32 to index
    %c0_72 = arith.constant 0 : index
    %217 = vector.load %arg2[%216, %c0_72] : memref<50x128xf32, #tpu.memory_space<vmem>>, vector<1x128xf32>
    %218 = arith.addf %212, %217 : vector<1x128xf32>
    %c2_i32_73 = arith.constant 2 : i32
    %219 = arith.addi %205, %c2_i32_73 : i32
    %220 = arith.index_cast %219 : i32 to index
    %221 = memref.load %arg1[%220] : memref<64xi32, #tpu.memory_space<smem>>
    %222 = arith.index_cast %221 : i32 to index
    %c0_74 = arith.constant 0 : index
    %223 = vector.load %arg2[%222, %c0_74] : memref<50x128xf32, #tpu.memory_space<vmem>>, vector<1x128xf32>
    %224 = arith.addf %218, %223 : vector<1x128xf32>
    %c3_i32_75 = arith.constant 3 : i32
    %225 = arith.addi %205, %c3_i32_75 : i32
    %226 = arith.index_cast %225 : i32 to index
    %227 = memref.load %arg1[%226] : memref<64xi32, #tpu.memory_space<smem>>
    %228 = arith.index_cast %227 : i32 to index
    %c0_76 = arith.constant 0 : index
    %229 = vector.load %arg2[%228, %c0_76] : memref<50x128xf32, #tpu.memory_space<vmem>>, vector<1x128xf32>
    %230 = arith.addf %224, %229 : vector<1x128xf32>
    %c4_i32_77 = arith.constant 4 : i32
    %231 = arith.addi %205, %c4_i32_77 : i32
    %232 = arith.index_cast %231 : i32 to index
    %233 = memref.load %arg1[%232] : memref<64xi32, #tpu.memory_space<smem>>
    %234 = arith.index_cast %233 : i32 to index
    %c0_78 = arith.constant 0 : index
    %235 = vector.load %arg2[%234, %c0_78] : memref<50x128xf32, #tpu.memory_space<vmem>>, vector<1x128xf32>
    %236 = arith.addf %230, %235 : vector<1x128xf32>
    %c5_i32_79 = arith.constant 5 : i32
    %237 = arith.addi %205, %c5_i32_79 : i32
    %238 = arith.index_cast %237 : i32 to index
    %239 = memref.load %arg1[%238] : memref<64xi32, #tpu.memory_space<smem>>
    %240 = arith.index_cast %239 : i32 to index
    %c0_80 = arith.constant 0 : index
    %241 = vector.load %arg2[%240, %c0_80] : memref<50x128xf32, #tpu.memory_space<vmem>>, vector<1x128xf32>
    %242 = arith.addf %236, %241 : vector<1x128xf32>
    %c6_i32_81 = arith.constant 6 : i32
    %243 = arith.addi %205, %c6_i32_81 : i32
    %244 = arith.index_cast %243 : i32 to index
    %245 = memref.load %arg1[%244] : memref<64xi32, #tpu.memory_space<smem>>
    %246 = arith.index_cast %245 : i32 to index
    %c0_82 = arith.constant 0 : index
    %247 = vector.load %arg2[%246, %c0_82] : memref<50x128xf32, #tpu.memory_space<vmem>>, vector<1x128xf32>
    %248 = arith.addf %242, %247 : vector<1x128xf32>
    %c7_i32_83 = arith.constant 7 : i32
    %249 = arith.addi %205, %c7_i32_83 : i32
    %250 = arith.index_cast %249 : i32 to index
    %251 = memref.load %arg1[%250] : memref<64xi32, #tpu.memory_space<smem>>
    %252 = arith.index_cast %251 : i32 to index
    %c0_84 = arith.constant 0 : index
    %253 = vector.load %arg2[%252, %c0_84] : memref<50x128xf32, #tpu.memory_space<vmem>>, vector<1x128xf32>
    %254 = arith.addf %248, %253 : vector<1x128xf32>
    %c8_i32_85 = arith.constant 8 : i32
    %c4 = arith.constant 4 : index
    %c0_86 = arith.constant 0 : index
    %255 = vector.load %arg3[%c4, %c0_86] : memref<8x128xf32, #tpu.memory_space<vmem>>, vector<1x128xf32>
    tpu.vector_store %arg3[%c4, %c0_86], %254 {strides = array<i32>} : memref<8x128xf32, #tpu.memory_space<vmem>>, vector<1x128xf32>,
    %c40_i32 = arith.constant 40 : i32
    %256 = arith.addi %0, %c40_i32 : i32
    %cst_87 = arith.constant 0.000000e+00 : f32
    %257 = vector.broadcast %cst_87 : f32 to vector<1x128xf32>
    %c0_i32_88 = arith.constant 0 : i32
    %258 = arith.addi %256, %c0_i32_88 : i32
    %259 = arith.index_cast %258 : i32 to index
    %260 = memref.load %arg1[%259] : memref<64xi32, #tpu.memory_space<smem>>
    %261 = arith.index_cast %260 : i32 to index
    %c0_89 = arith.constant 0 : index
    %262 = vector.load %arg2[%261, %c0_89] : memref<50x128xf32, #tpu.memory_space<vmem>>, vector<1x128xf32>
    %263 = arith.addf %257, %262 : vector<1x128xf32>
    %c1_i32_90 = arith.constant 1 : i32
    %264 = arith.addi %256, %c1_i32_90 : i32
    %265 = arith.index_cast %264 : i32 to index
    %266 = memref.load %arg1[%265] : memref<64xi32, #tpu.memory_space<smem>>
    %267 = arith.index_cast %266 : i32 to index
    %c0_91 = arith.constant 0 : index
    %268 = vector.load %arg2[%267, %c0_91] : memref<50x128xf32, #tpu.memory_space<vmem>>, vector<1x128xf32>
    %269 = arith.addf %263, %268 : vector<1x128xf32>
    %c2_i32_92 = arith.constant 2 : i32
    %270 = arith.addi %256, %c2_i32_92 : i32
    %271 = arith.index_cast %270 : i32 to index
    %272 = memref.load %arg1[%271] : memref<64xi32, #tpu.memory_space<smem>>
    %273 = arith.index_cast %272 : i32 to index
    %c0_93 = arith.constant 0 : index
    %274 = vector.load %arg2[%273, %c0_93] : memref<50x128xf32, #tpu.memory_space<vmem>>, vector<1x128xf32>
    %275 = arith.addf %269, %274 : vector<1x128xf32>
    %c3_i32_94 = arith.constant 3 : i32
    %276 = arith.addi %256, %c3_i32_94 : i32
    %277 = arith.index_cast %276 : i32 to index
    %278 = memref.load %arg1[%277] : memref<64xi32, #tpu.memory_space<smem>>
    %279 = arith.index_cast %278 : i32 to index
    %c0_95 = arith.constant 0 : index
    %280 = vector.load %arg2[%279, %c0_95] : memref<50x128xf32, #tpu.memory_space<vmem>>, vector<1x128xf32>
    %281 = arith.addf %275, %280 : vector<1x128xf32>
    %c4_i32_96 = arith.constant 4 : i32
    %282 = arith.addi %256, %c4_i32_96 : i32
    %283 = arith.index_cast %282 : i32 to index
    %284 = memref.load %arg1[%283] : memref<64xi32, #tpu.memory_space<smem>>
    %285 = arith.index_cast %284 : i32 to index
    %c0_97 = arith.constant 0 : index
    %286 = vector.load %arg2[%285, %c0_97] : memref<50x128xf32, #tpu.memory_space<vmem>>, vector<1x128xf32>
    %287 = arith.addf %281, %286 : vector<1x128xf32>
    %c5_i32_98 = arith.constant 5 : i32
    %288 = arith.addi %256, %c5_i32_98 : i32
    %289 = arith.index_cast %288 : i32 to index
    %290 = memref.load %arg1[%289] : memref<64xi32, #tpu.memory_space<smem>>
    %291 = arith.index_cast %290 : i32 to index
    %c0_99 = arith.constant 0 : index
    %292 = vector.load %arg2[%291, %c0_99] : memref<50x128xf32, #tpu.memory_space<vmem>>, vector<1x128xf32>
    %293 = arith.addf %287, %292 : vector<1x128xf32>
    %c6_i32_100 = arith.constant 6 : i32
    %294 = arith.addi %256, %c6_i32_100 : i32
    %295 = arith.index_cast %294 : i32 to index
    %296 = memref.load %arg1[%295] : memref<64xi32, #tpu.memory_space<smem>>
    %297 = arith.index_cast %296 : i32 to index
    %c0_101 = arith.constant 0 : index
    %298 = vector.load %arg2[%297, %c0_101] : memref<50x128xf32, #tpu.memory_space<vmem>>, vector<1x128xf32>
    %299 = arith.addf %293, %298 : vector<1x128xf32>
    %c7_i32_102 = arith.constant 7 : i32
    %300 = arith.addi %256, %c7_i32_102 : i32
    %301 = arith.index_cast %300 : i32 to index
    %302 = memref.load %arg1[%301] : memref<64xi32, #tpu.memory_space<smem>>
    %303 = arith.index_cast %302 : i32 to index
    %c0_103 = arith.constant 0 : index
    %304 = vector.load %arg2[%303, %c0_103] : memref<50x128xf32, #tpu.memory_space<vmem>>, vector<1x128xf32>
    %305 = arith.addf %299, %304 : vector<1x128xf32>
    %c8_i32_104 = arith.constant 8 : i32
    %c5 = arith.constant 5 : index
    %c0_105 = arith.constant 0 : index
    %306 = vector.load %arg3[%c5, %c0_105] : memref<8x128xf32, #tpu.memory_space<vmem>>, vector<1x128xf32>
    tpu.vector_store %arg3[%c5, %c0_105], %305 {strides = array<i32>} : memref<8x128xf32, #tpu.memory_space<vmem>>, vector<1x128xf32>,
    %c48_i32 = arith.constant 48 : i32
    %307 = arith.addi %0, %c48_i32 : i32
    %cst_106 = arith.constant 0.000000e+00 : f32
    %308 = vector.broadcast %cst_106 : f32 to vector<1x128xf32>
    %c0_i32_107 = arith.constant 0 : i32
    %309 = arith.addi %307, %c0_i32_107 : i32
    %310 = arith.index_cast %309 : i32 to index
    %311 = memref.load %arg1[%310] : memref<64xi32, #tpu.memory_space<smem>>
    %312 = arith.index_cast %311 : i32 to index
    %c0_108 = arith.constant 0 : index
    %313 = vector.load %arg2[%312, %c0_108] : memref<50x128xf32, #tpu.memory_space<vmem>>, vector<1x128xf32>
    %314 = arith.addf %308, %313 : vector<1x128xf32>
    %c1_i32_109 = arith.constant 1 : i32
    %315 = arith.addi %307, %c1_i32_109 : i32
    %316 = arith.index_cast %315 : i32 to index
    %317 = memref.load %arg1[%316] : memref<64xi32, #tpu.memory_space<smem>>
    %318 = arith.index_cast %317 : i32 to index
    %c0_110 = arith.constant 0 : index
    %319 = vector.load %arg2[%318, %c0_110] : memref<50x128xf32, #tpu.memory_space<vmem>>, vector<1x128xf32>
    %320 = arith.addf %314, %319 : vector<1x128xf32>
    %c2_i32_111 = arith.constant 2 : i32
    %321 = arith.addi %307, %c2_i32_111 : i32
    %322 = arith.index_cast %321 : i32 to index
    %323 = memref.load %arg1[%322] : memref<64xi32, #tpu.memory_space<smem>>
    %324 = arith.index_cast %323 : i32 to index
    %c0_112 = arith.constant 0 : index
    %325 = vector.load %arg2[%324, %c0_112] : memref<50x128xf32, #tpu.memory_space<vmem>>, vector<1x128xf32>
    %326 = arith.addf %320, %325 : vector<1x128xf32>
    %c3_i32_113 = arith.constant 3 : i32
    %327 = arith.addi %307, %c3_i32_113 : i32
    %328 = arith.index_cast %327 : i32 to index
    %329 = memref.load %arg1[%328] : memref<64xi32, #tpu.memory_space<smem>>
    %330 = arith.index_cast %329 : i32 to index
    %c0_114 = arith.constant 0 : index
    %331 = vector.load %arg2[%330, %c0_114] : memref<50x128xf32, #tpu.memory_space<vmem>>, vector<1x128xf32>
    %332 = arith.addf %326, %331 : vector<1x128xf32>
    %c4_i32_115 = arith.constant 4 : i32
    %333 = arith.addi %307, %c4_i32_115 : i32
    %334 = arith.index_cast %333 : i32 to index
    %335 = memref.load %arg1[%334] : memref<64xi32, #tpu.memory_space<smem>>
    %336 = arith.index_cast %335 : i32 to index
    %c0_116 = arith.constant 0 : index
    %337 = vector.load %arg2[%336, %c0_116] : memref<50x128xf32, #tpu.memory_space<vmem>>, vector<1x128xf32>
    %338 = arith.addf %332, %337 : vector<1x128xf32>
    %c5_i32_117 = arith.constant 5 : i32
    %339 = arith.addi %307, %c5_i32_117 : i32
    %340 = arith.index_cast %339 : i32 to index
    %341 = memref.load %arg1[%340] : memref<64xi32, #tpu.memory_space<smem>>
    %342 = arith.index_cast %341 : i32 to index
    %c0_118 = arith.constant 0 : index
    %343 = vector.load %arg2[%342, %c0_118] : memref<50x128xf32, #tpu.memory_space<vmem>>, vector<1x128xf32>
    %344 = arith.addf %338, %343 : vector<1x128xf32>
    %c6_i32_119 = arith.constant 6 : i32
    %345 = arith.addi %307, %c6_i32_119 : i32
    %346 = arith.index_cast %345 : i32 to index
    %347 = memref.load %arg1[%346] : memref<64xi32, #tpu.memory_space<smem>>
    %348 = arith.index_cast %347 : i32 to index
    %c0_120 = arith.constant 0 : index
    %349 = vector.load %arg2[%348, %c0_120] : memref<50x128xf32, #tpu.memory_space<vmem>>, vector<1x128xf32>
    %350 = arith.addf %344, %349 : vector<1x128xf32>
    %c7_i32_121 = arith.constant 7 : i32
    %351 = arith.addi %307, %c7_i32_121 : i32
    %352 = arith.index_cast %351 : i32 to index
    %353 = memref.load %arg1[%352] : memref<64xi32, #tpu.memory_space<smem>>
    %354 = arith.index_cast %353 : i32 to index
    %c0_122 = arith.constant 0 : index
    %355 = vector.load %arg2[%354, %c0_122] : memref<50x128xf32, #tpu.memory_space<vmem>>, vector<1x128xf32>
    %356 = arith.addf %350, %355 : vector<1x128xf32>
    %c8_i32_123 = arith.constant 8 : i32
    %c6 = arith.constant 6 : index
    %c0_124 = arith.constant 0 : index
    %357 = vector.load %arg3[%c6, %c0_124] : memref<8x128xf32, #tpu.memory_space<vmem>>, vector<1x128xf32>
    tpu.vector_store %arg3[%c6, %c0_124], %356 {strides = array<i32>} : memref<8x128xf32, #tpu.memory_space<vmem>>, vector<1x128xf32>,
    %c56_i32 = arith.constant 56 : i32
    %358 = arith.addi %0, %c56_i32 : i32
    %cst_125 = arith.constant 0.000000e+00 : f32
    %359 = vector.broadcast %cst_125 : f32 to vector<1x128xf32>
    %c0_i32_126 = arith.constant 0 : i32
    %360 = arith.addi %358, %c0_i32_126 : i32
    %361 = arith.index_cast %360 : i32 to index
    %362 = memref.load %arg1[%361] : memref<64xi32, #tpu.memory_space<smem>>
    %363 = arith.index_cast %362 : i32 to index
    %c0_127 = arith.constant 0 : index
    %364 = vector.load %arg2[%363, %c0_127] : memref<50x128xf32, #tpu.memory_space<vmem>>, vector<1x128xf32>
    %365 = arith.addf %359, %364 : vector<1x128xf32>
    %c1_i32_128 = arith.constant 1 : i32
    %366 = arith.addi %358, %c1_i32_128 : i32
    %367 = arith.index_cast %366 : i32 to index
    %368 = memref.load %arg1[%367] : memref<64xi32, #tpu.memory_space<smem>>
    %369 = arith.index_cast %368 : i32 to index
    %c0_129 = arith.constant 0 : index
    %370 = vector.load %arg2[%369, %c0_129] : memref<50x128xf32, #tpu.memory_space<vmem>>, vector<1x128xf32>
    %371 = arith.addf %365, %370 : vector<1x128xf32>
    %c2_i32_130 = arith.constant 2 : i32
    %372 = arith.addi %358, %c2_i32_130 : i32
    %373 = arith.index_cast %372 : i32 to index
    %374 = memref.load %arg1[%373] : memref<64xi32, #tpu.memory_space<smem>>
    %375 = arith.index_cast %374 : i32 to index
    %c0_131 = arith.constant 0 : index
    %376 = vector.load %arg2[%375, %c0_131] : memref<50x128xf32, #tpu.memory_space<vmem>>, vector<1x128xf32>
    %377 = arith.addf %371, %376 : vector<1x128xf32>
    %c3_i32_132 = arith.constant 3 : i32
    %378 = arith.addi %358, %c3_i32_132 : i32
    %379 = arith.index_cast %378 : i32 to index
    %380 = memref.load %arg1[%379] : memref<64xi32, #tpu.memory_space<smem>>
    %381 = arith.index_cast %380 : i32 to index
    %c0_133 = arith.constant 0 : index
    %382 = vector.load %arg2[%381, %c0_133] : memref<50x128xf32, #tpu.memory_space<vmem>>, vector<1x128xf32>
    %383 = arith.addf %377, %382 : vector<1x128xf32>
    %c4_i32_134 = arith.constant 4 : i32
    %384 = arith.addi %358, %c4_i32_134 : i32
    %385 = arith.index_cast %384 : i32 to index
    %386 = memref.load %arg1[%385] : memref<64xi32, #tpu.memory_space<smem>>
    %387 = arith.index_cast %386 : i32 to index
    %c0_135 = arith.constant 0 : index
    %388 = vector.load %arg2[%387, %c0_135] : memref<50x128xf32, #tpu.memory_space<vmem>>, vector<1x128xf32>
    %389 = arith.addf %383, %388 : vector<1x128xf32>
    %c5_i32_136 = arith.constant 5 : i32
    %390 = arith.addi %358, %c5_i32_136 : i32
    %391 = arith.index_cast %390 : i32 to index
    %392 = memref.load %arg1[%391] : memref<64xi32, #tpu.memory_space<smem>>
    %393 = arith.index_cast %392 : i32 to index
    %c0_137 = arith.constant 0 : index
    %394 = vector.load %arg2[%393, %c0_137] : memref<50x128xf32, #tpu.memory_space<vmem>>, vector<1x128xf32>
    %395 = arith.addf %389, %394 : vector<1x128xf32>
    %c6_i32_138 = arith.constant 6 : i32
    %396 = arith.addi %358, %c6_i32_138 : i32
    %397 = arith.index_cast %396 : i32 to index
    %398 = memref.load %arg1[%397] : memref<64xi32, #tpu.memory_space<smem>>
    %399 = arith.index_cast %398 : i32 to index
    %c0_139 = arith.constant 0 : index
    %400 = vector.load %arg2[%399, %c0_139] : memref<50x128xf32, #tpu.memory_space<vmem>>, vector<1x128xf32>
    %401 = arith.addf %395, %400 : vector<1x128xf32>
    %c7_i32_140 = arith.constant 7 : i32
    %402 = arith.addi %358, %c7_i32_140 : i32
    %403 = arith.index_cast %402 : i32 to index
    %404 = memref.load %arg1[%403] : memref<64xi32, #tpu.memory_space<smem>>
    %405 = arith.index_cast %404 : i32 to index
    %c0_141 = arith.constant 0 : index
    %406 = vector.load %arg2[%405, %c0_141] : memref<50x128xf32, #tpu.memory_space<vmem>>, vector<1x128xf32>
    %407 = arith.addf %401, %406 : vector<1x128xf32>
    %c8_i32_142 = arith.constant 8 : i32
    %c7 = arith.constant 7 : index
    %c0_143 = arith.constant 0 : index
    %408 = vector.load %arg3[%c7, %c0_143] : memref<8x128xf32, #tpu.memory_space<vmem>>, vector<1x128xf32>
    tpu.vector_store %arg3[%c7, %c0_143], %407 {strides = array<i32>} : memref<8x128xf32, #tpu.memory_space<vmem>>, vector<1x128xf32>,
    return
  }
  func.func @transform_0(%arg0: i32, %arg1: memref<64xi32, #tpu.memory_space<smem>>) -> (i32, i32) {
    %c0_i32 = arith.constant 0 : i32
    %c0_i32_0 = arith.constant 0 : i32
    %c0_i32_1 = arith.constant 0 : i32
    return %c0_i32, %c0_i32_0 : i32, i32
  }
  func.func @transform_1(%arg0: i32, %arg1: memref<64xi32, #tpu.memory_space<smem>>) -> (i32, i32) {
    %c0_i32 = arith.constant 0 : i32
    %c0_i32_0 = arith.constant 0 : i32
    return %arg0, %c0_i32 : i32, i32
  }
}

</mosaic_0001>

<bundles_post_ra>
// kernel: word_avg_forward.1
= control target key start
LH: loop header
LB: loop body
LE: loop exit
PB: predicated region body
PF: predicated region fallthrough
CT: control target
= control target key end

     0   :  { %s537_s12 = smov [#allocation3]   ;;  %s634_s0 = inlined_call_operand.vmem [shape: s32[64], index: 0, kind: input, shape index: {}]   ;;  %s635_s1 = inlined_call_operand.hbm [shape: f32[50,128], index: 1, kind: input, shape index: {}]   ;;  %s636_s2 = inlined_call_operand.vmem [shape: f32[8,128], index: 2, kind: output, shape index: {}]  }
   0x1   :  { %s8_s11 = sshll.u32 %s634_s0, 4  ;;  %s9_s11 = int_to_ptr.vmem [resolvable:$true] %s8_s11 }
   0x2   :  { %11 = dma.vmem_to_smem %s9_s11, 16, %s537_s12, [#allocation2] }
   0x3   :  { %533 = dma.done.wait [#allocation2], 16 }
   0x4   :  { %534 = vsyncadd [#allocation2], 4294967280 }
   0x5   :  { %14 = sfence }
   0x6   :  { %15 = vsyncpa [#allocation5], 0  ;;  %s20_s15 = sshll.u32 %s635_s1, 4  ;;  %s538_s16 = smov [#allocation4]   ;;  %s21_s15 = int_to_ptr.hbm [resolvable:$true] %s20_s15 }
   0x7   :  { %s22_s17 = sshll.u32 %s538_s16, 4  ;;  %s539_s18 = smov 128   ;;  %s23_s17 = int_to_ptr.vmem [resolvable:$true] %s22_s17 }
   0x8   :  { %s540_s19 = smov 8  }
   0x9   :  { %28 = dma.hbm_to_vmem [thread:$0]  %s21_s15, 896, %s23_s17, [#allocation5], %s539_s18, %s539_s18, %s540_s19  }
   0xa   :  { %535 = dma.done.wait [#allocation5], 896  }
   0xb   :  { %536 = vsyncadd [#allocation5], 4294966400  ;;  %s34_s0 = sld [smem:[#allocation3]] }
   0xc   :  { %s430_s20 = sld [smem:[#allocation3 + $0x1]] }
   0xd   :  { %s431_s21 = sld [smem:[#allocation3 + $0x2]] }
   0xe   :  { %s432_s22 = sld [smem:[#allocation3 + $0x3]] }
   0xf   :  { %s433_s23 = sld [smem:[#allocation3 + $0x4]] }
  0x10   :  { %s434_s24 = sld [smem:[#allocation3 + $0x5]] }
  0x11   :  { %s435_s25 = sld [smem:[#allocation3 + $0x6]]  ;;  %s35_s26 = scalar_lea.vmem [#allocation4], %s34_s0 }
  0x12   :  { %v36_v0 = vld [vmem:[%s35_s26] sm:$0x1]  ;;  %s436_s27 = sld [smem:[#allocation3 + $0x7]]  ;;  %s40_s1 = scalar_lea.vmem [#allocation4], %s430_s20 }
  0x13   :  { %v41_v1 = vld [vmem:[%s40_s1] sm:$0x1]  ;;  %s437_s28 = sld [smem:[#allocation3 + $0x8]]  ;;  %s45_s29 = scalar_lea.vmem [#allocation4], %s431_s21 }
  0x14   :  { %v42_v2 = vadd.f32 %v41_v1, %v36_v0  ;;  %v46_v3 = vld [vmem:[%s45_s29] sm:$0x1]  ;;  %s438_s30 = sld [smem:[#allocation3 + $0x9]]  ;;  %s50_s3 = scalar_lea.vmem [#allocation4], %s432_s22 }
  0x15   :  { %v51_v4 = vld [vmem:[%s50_s3] sm:$0x1]  ;;  %s439_s4 = sld [smem:[#allocation3 + $0xa]]  ;;  %s55_s6 = scalar_lea.vmem [#allocation4], %s433_s23 }
  0x16   :  { %v47_v5 = vadd.f32 %v46_v3, %v42_v2  ;;  %s440_s5 = sld [smem:[#allocation3 + $0xb]]  ;;  %v56_v6 = vld [vmem:[%s55_s6] sm:$0x1]  ;;  %s60_s8 = scalar_lea.vmem [#allocation4], %s434_s24 }
  0x17   :  { %s562_s7 = sld [smem:[#allocation3 + $0xc]]  ;;  %v61_v8 = vld [vmem:[%s60_s8] sm:$0x1]  ;;  %s65_s10 = scalar_lea.vmem [#allocation4], %s435_s25 }
  0x18   :  { %v52_v7 = vadd.f32 %v51_v4, %v47_v5  ;;  %s564_s9 = sld [smem:[#allocation3 + $0xd]]  ;;  %v66_v9 = vld [vmem:[%s65_s10] sm:$0x1]  ;;  %s70_s14 = scalar_lea.vmem [#allocation4], %s436_s27 }
  0x19   :  { %s566_s11 = sld [smem:[#allocation3 + $0xe]]  ;;  %s76_s12 = scalar_lea.vmem [#allocation4], %s437_s28  ;;  %v71_v12 = vld [vmem:[%s70_s14] sm:$0x1] }
  0x1a   :  { %v57_v10 = vadd.f32 %v56_v6, %v52_v7  ;;  %v77_v11 = vld [vmem:[%s76_s12] sm:$0x1]  ;;  %s568_s13 = sld [smem:[#allocation3 + $0xf]]  ;;  %s81_s15 = scalar_lea.vmem [#allocation4], %s438_s30 }
  0x1b   :  { %v82_v13 = vld [vmem:[%s81_s15] sm:$0x1]  ;;  %s445_s16 = sld [smem:[#allocation3 + $0x10]]  ;;  %s86_s17 = scalar_lea.vmem [#allocation4], %s439_s4 }
  0x1c   :  { %v62_v14 = vadd.f32 %v61_v8, %v57_v10  ;;  %v83_v15 = vadd.f32 %v82_v13, %v77_v11  ;;  %v87_v16 = vld [vmem:[%s86_s17] sm:$0x1]  ;;  %s446_s18 = sld [smem:[#allocation3 + $0x11]]  ;;  %s91_s19 = scalar_lea.vmem [#allocation4], %s440_s5 }
  0x1d   :  { %v92_v17 = vld [vmem:[%s91_s19] sm:$0x1]  ;;  %s447_s0 = sld [smem:[#allocation3 + $0x12]]  ;;  %s96_s21 = scalar_lea.vmem [#allocation4], %s562_s7 }
  0x1e   :  { %v67_v18 = vadd.f32 %v66_v9, %v62_v14  ;;  %v88_v19 = vadd.f32 %v87_v16, %v83_v15  ;;  %s448_s20 = sld [smem:[#allocation3 + $0x13]]  ;;  %v97_v20 = vld [vmem:[%s96_s21] sm:$0x1]  ;;  %s101_s23 = scalar_lea.vmem [#allocation4], %s564_s9 }
  0x1f   :  { %s571_s22 = sld [smem:[#allocation3 + $0x14]]  ;;  %v102_v23 = vld [vmem:[%s101_s23] sm:$0x1]  ;;  %s106_s25 = scalar_lea.vmem [#allocation4], %s566_s11 }
  0x20   :  { %v72_v21 = vadd.f32 %v71_v12, %v67_v18  ;;  %v93_v22 = vadd.f32 %v92_v17, %v88_v19  ;;  %s574_s24 = sld [smem:[#allocation3 + $0x15]]  ;;  %v107_v24 = vld [vmem:[%s106_s25] sm:$0x1]  ;;  %s111_s30 = scalar_lea.vmem [#allocation4], %s568_s13 }
  0x21   :  { %s577_s26 = sld [smem:[#allocation3 + $0x16]]  ;;  %s117_s28 = scalar_lea.vmem [#allocation4], %s445_s16  ;;  %v112_v27 = vld [vmem:[%s111_s30] sm:$0x1] }
  0x22   :  { %73 = vst [vmem:[%s636_s2] sm:$0x1] %v72_v21  ;;  %v98_v25 = vadd.f32 %v97_v20, %v93_v22  ;;  %v118_v26 = vld [vmem:[%s117_s28] sm:$0x1]  ;;  %s582_s29 = sld [smem:[#allocation3 + $0x17]]  ;;  %s122_s3 = scalar_lea.vmem [#allocation4], %s446_s18 }
  0x23   :  { %v123_v28 = vld [vmem:[%s122_s3] sm:$0x1]  ;;  %s453_s4 = sld [smem:[#allocation3 + $0x18]]  ;;  %s127_s5 = scalar_lea.vmem [#allocation4], %s447_s0 }
  0x24   :  { %v103_v29 = vadd.f32 %v102_v23, %v98_v25  ;;  %v124_v30 = vadd.f32 %v123_v28, %v118_v26  ;;  %v128_v31 = vld [vmem:[%s127_s5] sm:$0x1]  ;;  %s454_s6 = sld [smem:[#allocation3 + $0x19]]  ;;  %s132_s7 = scalar_lea.vmem [#allocation4], %s448_s20 }
  0x25   :  { %v133_v32 = vld [vmem:[%s132_s7] sm:$0x1]  ;;  %s455_s8 = sld [smem:[#allocation3 + $0x1a]]  ;;  %s137_s10 = scalar_lea.vmem [#allocation4], %s571_s22 }
  0x26   :  { %v108_v33 = vadd.f32 %v107_v24, %v103_v29  ;;  %v129_v34 = vadd.f32 %v128_v31, %v124_v30  ;;  %s456_s9 = sld [smem:[#allocation3 + $0x1b]]  ;;  %v138_v35 = vld [vmem:[%s137_s10] sm:$0x1]  ;;  %s142_s12 = scalar_lea.vmem [#allocation4], %s574_s24 }
  0x27   :  { %s586_s11 = sld [smem:[#allocation3 + $0x1c]]  ;;  %v143_v38 = vld [vmem:[%s142_s12] sm:$0x1]  ;;  %s147_s14 = scalar_lea.vmem [#allocation4], %s577_s26 }
  0x28   :  { %v113_v36 = vadd.f32 %v112_v27, %v108_v33  ;;  %v134_v37 = vadd.f32 %v133_v32, %v129_v34  ;;  %s589_s13 = sld [smem:[#allocation3 + $0x1d]]  ;;  %v148_v39 = vld [vmem:[%s147_s14] sm:$0x1]  ;;  %s152_s19 = scalar_lea.vmem [#allocation4], %s582_s29 }
  0x29   :  { %s592_s15 = sld [smem:[#allocation3 + $0x1e]]  ;;  %s158_s18 = scalar_lea.vmem [#allocation4], %s453_s4  ;;  %v153_v42 = vld [vmem:[%s152_s19] sm:$0x1] }
  0x2a   :  { %114 = vst [vmem:[%s636_s2 + $0x1] sm:$0x1] %v113_v36  ;;  %v139_v40 = vadd.f32 %v138_v35, %v134_v37  ;;  %v159_v41 = vld [vmem:[%s158_s18] sm:$0x1]  ;;  %s163_s0 = scalar_lea.vmem [#allocation4], %s454_s6  ;;  %s460_s20 = sld [smem:[#allocation3 + $0x1f]] }
  0x2b   :  { %v164_v43 = vld [vmem:[%s163_s0] sm:$0x1]  ;;  %s168_s21 = scalar_lea.vmem [#allocation4], %s455_s8  ;;  %s461_s22 = sld [smem:[#allocation3 + $0x20]] }
  0x2c   :  { %v144_v44 = vadd.f32 %v143_v38, %v139_v40  ;;  %v165_v45 = vadd.f32 %v164_v43, %v159_v41  ;;  %v169_v46 = vld [vmem:[%s168_s21] sm:$0x1]  ;;  %s173_s23 = scalar_lea.vmem [#allocation4], %s456_s9  ;;  %s462_s24 = sld [smem:[#allocation3 + $0x21]] }
  0x2d   :  { %v174_v47 = vld [vmem:[%s173_s23] sm:$0x1]  ;;  %s463_s25 = sld [smem:[#allocation3 + $0x22]]  ;;  %s178_s26 = scalar_lea.vmem [#allocation4], %s586_s11 }
  0x2e   :  { %v149_v48 = vadd.f32 %v148_v39, %v144_v44  ;;  %v170_v49 = vadd.f32 %v169_v46, %v165_v45  ;;  %v179_v50 = vld [vmem:[%s178_s26] sm:$0x1]  ;;  %s464_s27 = sld [smem:[#allocation3 + $0x23]]  ;;  %s183_s28 = scalar_lea.vmem [#allocation4], %s589_s13 }
  0x2f   :  { %s599_s1 = sld [smem:[#allocation3 + $0x24]]  ;;  %v184_v53 = vld [vmem:[%s183_s28] sm:$0x1]  ;;  %s188_s4 = scalar_lea.vmem [#allocation4], %s592_s15 }
  0x30   :  { %v154_v51 = vadd.f32 %v153_v42, %v149_v48  ;;  %v175_v52 = vadd.f32 %v174_v47, %v170_v49  ;;  %s602_s29 = sld [smem:[#allocation3 + $0x25]]  ;;  %v189_v55 = vld [vmem:[%s188_s4] sm:$0x1]  ;;  %s193_s5 = scalar_lea.vmem [#allocation4], %s460_s20 }
  0x31   :  { %v194_v56 = vld [vmem:[%s193_s5] sm:$0x1]  ;;  %s199_s6 = scalar_lea.vmem [#allocation4], %s461_s22  ;;  %s467_s7 = sld [smem:[#allocation3 + $0x26]] }
  0x32   :  { %155 = vst [vmem:[%s636_s2 + $0x2] sm:$0x1] %v154_v51  ;;  %v180_v54 = vadd.f32 %v179_v50, %v175_v52  ;;  %v200_v57 = vld [vmem:[%s199_s6] sm:$0x1]  ;;  %s204_s8 = scalar_lea.vmem [#allocation4], %s462_s24  ;;  %s468_s9 = sld [smem:[#allocation3 + $0x27]] }
  0x33   :  { %v205_v59 = vld [vmem:[%s204_s8] sm:$0x1]  ;;  %s209_s10 = scalar_lea.vmem [#allocation4], %s463_s25  ;;  %s469_s11 = sld [smem:[#allocation3 + $0x28]] }
  0x34   :  { %v185_v58 = vadd.f32 %v184_v53, %v180_v54  ;;  %v206_v60 = vadd.f32 %v205_v59, %v200_v57  ;;  %v210_v61 = vld [vmem:[%s209_s10] sm:$0x1]  ;;  %s214_s12 = scalar_lea.vmem [#allocation4], %s464_s27  ;;  %s470_s13 = sld [smem:[#allocation3 + $0x29]] }
  0x35   :  { %v215_v63 = vld [vmem:[%s214_s12] sm:$0x1]  ;;  %s471_s14 = sld [smem:[#allocation3 + $0x2a]]  ;;  %s219_s15 = scalar_lea.vmem [#allocation4], %s599_s1 }
  0x36   :  { %v190_v62 = vadd.f32 %v189_v55, %v185_v58  ;;  %v211_v0 = vadd.f32 %v210_v61, %v206_v60  ;;  %v220_v2 = vld [vmem:[%s219_s15] sm:$0x1]  ;;  %s472_s16 = sld [smem:[#allocation3 + $0x2b]]  ;;  %s224_s0 = scalar_lea.vmem [#allocation4], %s602_s29 }
  0x37   :  { %s609_s17 = sld [smem:[#allocation3 + $0x2c]]  ;;  %v225_v4 = vld [vmem:[%s224_s0] sm:$0x1]  ;;  %s229_s20 = scalar_lea.vmem [#allocation4], %s467_s7 }
  0x38   :  { %v195_v1 = vadd.f32 %v194_v56, %v190_v62  ;;  %v216_v3 = vadd.f32 %v215_v63, %v211_v0  ;;  %v230_v6 = vld [vmem:[%s229_s20] sm:$0x1]  ;;  %s474_s21 = sld [smem:[#allocation3 + $0x2d]]  ;;  %s234_s22 = scalar_lea.vmem [#allocation4], %s468_s9 }
  0x39   :  { %v235_v7 = vld [vmem:[%s234_s22] sm:$0x1]  ;;  %s240_s23 = scalar_lea.vmem [#allocation4], %s469_s11  ;;  %s475_s24 = sld [smem:[#allocation3 + $0x2e]] }
  0x3a   :  { %196 = vst [vmem:[%s636_s2 + $0x3] sm:$0x1] %v195_v1  ;;  %v221_v5 = vadd.f32 %v220_v2, %v216_v3  ;;  %v241_v8 = vld [vmem:[%s240_s23] sm:$0x1]  ;;  %s245_s25 = scalar_lea.vmem [#allocation4], %s470_s13  ;;  %s476_s26 = sld [smem:[#allocation3 + $0x2f]] }
  0x3b   :  { %v246_v10 = vld [vmem:[%s245_s25] sm:$0x1]  ;;  %s250_s27 = scalar_lea.vmem [#allocation4], %s471_s14  ;;  %s477_s1 = sld [smem:[#allocation3 + $0x30]] }
  0x3c   :  { %v226_v9 = vadd.f32 %v225_v4, %v221_v5  ;;  %v247_v11 = vadd.f32 %v246_v10, %v241_v8  ;;  %v251_v12 = vld [vmem:[%s250_s27] sm:$0x1]  ;;  %s255_s28 = scalar_lea.vmem [#allocation4], %s472_s16  ;;  %s478_s29 = sld [smem:[#allocation3 + $0x31]] }
  0x3d   :  { %v256_v14 = vld [vmem:[%s255_s28] sm:$0x1]  ;;  %s479_s30 = sld [smem:[#allocation3 + $0x32]]  ;;  %s260_s3 = scalar_lea.vmem [#allocation4], %s609_s17 }
  0x3e   :  { %v231_v13 = vadd.f32 %v230_v6, %v226_v9  ;;  %v252_v15 = vadd.f32 %v251_v12, %v247_v11  ;;  %v261_v17 = vld [vmem:[%s260_s3] sm:$0x1]  ;;  %s480_s4 = sld [smem:[#allocation3 + $0x33]]  ;;  %s265_s8 = scalar_lea.vmem [#allocation4], %s474_s21 }
  0x3f   :  { %s616_s5 = sld [smem:[#allocation3 + $0x34]]  ;;  %v266_v19 = vld [vmem:[%s265_s8] sm:$0x1]  ;;  %s270_s9 = scalar_lea.vmem [#allocation4], %s475_s24 }
  0x40   :  { %v236_v16 = vadd.f32 %v235_v7, %v231_v13  ;;  %v257_v18 = vadd.f32 %v256_v14, %v252_v15  ;;  %v271_v21 = vld [vmem:[%s270_s9] sm:$0x1]  ;;  %s482_s10 = sld [smem:[#allocation3 + $0x35]]  ;;  %s275_s11 = scalar_lea.vmem [#allocation4], %s476_s26 }
  0x41   :  { %v276_v22 = vld [vmem:[%s275_s11] sm:$0x1]  ;;  %s281_s12 = scalar_lea.vmem [#allocation4], %s477_s1  ;;  %s483_s13 = sld [smem:[#allocation3 + $0x36]] }
  0x42   :  { %237 = vst [vmem:[%s636_s2 + $0x4] sm:$0x1] %v236_v16  ;;  %v262_v20 = vadd.f32 %v261_v17, %v257_v18  ;;  %v282_v23 = vld [vmem:[%s281_s12] sm:$0x1]  ;;  %s286_s14 = scalar_lea.vmem [#allocation4], %s478_s29  ;;  %s621_s15 = sld [smem:[#allocation3 + $0x37]] }
  0x43   :  { %v287_v25 = vld [vmem:[%s286_s14] sm:$0x1]  ;;  %s291_s16 = scalar_lea.vmem [#allocation4], %s479_s30  ;;  %s485_s17 = sld [smem:[#allocation3 + $0x38]] }
  0x44   :  { %v267_v24 = vadd.f32 %v266_v19, %v262_v20  ;;  %v288_v26 = vadd.f32 %v287_v25, %v282_v23  ;;  %v292_v27 = vld [vmem:[%s291_s16] sm:$0x1]  ;;  %s296_s18 = scalar_lea.vmem [#allocation4], %s480_s4  ;;  %s486_s19 = sld [smem:[#allocation3 + $0x39]] }
  0x45   :  { %v297_v29 = vld [vmem:[%s296_s18] sm:$0x1]  ;;  %s487_s0 = sld [smem:[#allocation3 + $0x3a]]  ;;  %s301_s20 = scalar_lea.vmem [#allocation4], %s616_s5 }
  0x46   :  { %v272_v28 = vadd.f32 %v271_v21, %v267_v24  ;;  %v293_v30 = vadd.f32 %v292_v27, %v288_v26  ;;  %v302_v32 = vld [vmem:[%s301_s20] sm:$0x1]  ;;  %s488_s21 = sld [smem:[#allocation3 + $0x3b]]  ;;  %s306_s25 = scalar_lea.vmem [#allocation4], %s482_s10 }
  0x47   :  { %s489_s22 = sld [smem:[#allocation3 + $0x3c]]  ;;  %v307_v34 = vld [vmem:[%s306_s25] sm:$0x1]  ;;  %s311_s26 = scalar_lea.vmem [#allocation4], %s483_s13 }
  0x48   :  { %v277_v31 = vadd.f32 %v276_v22, %v272_v28  ;;  %v298_v33 = vadd.f32 %v297_v29, %v293_v30  ;;  %v312_v36 = vld [vmem:[%s311_s26] sm:$0x1]  ;;  %s490_s27 = sld [smem:[#allocation3 + $0x3d]]  ;;  %s316_s3 = scalar_lea.vmem [#allocation4], %s621_s15 }
  0x49   :  { %s322_s1 = scalar_lea.vmem [#allocation4], %s485_s17  ;;  %s491_s28 = sld [smem:[#allocation3 + $0x3e]]  ;;  %v317_v40 = vld [vmem:[%s316_s3] sm:$0x1] }
  0x4a   :  { %278 = vst [vmem:[%s636_s2 + $0x5] sm:$0x1] %v277_v31  ;;  %v303_v35 = vadd.f32 %v302_v32, %v298_v33  ;;  %v323_v37 = vld [vmem:[%s322_s1] sm:$0x1]  ;;  %s327_s29 = scalar_lea.vmem [#allocation4], %s486_s19  ;;  %s492_s30 = sld [smem:[#allocation3 + $0x3f]] }
  0x4b   :  { %v328_v39 = vld [vmem:[%s327_s29] sm:$0x1]  ;;  %s332_s4 = scalar_lea.vmem [#allocation4], %s487_s0 }
  0x4c   :  { %v308_v38 = vadd.f32 %v307_v34, %v303_v35  ;;  %v329_v41 = vadd.f32 %v328_v39, %v323_v37  ;;  %v333_v42 = vld [vmem:[%s332_s4] sm:$0x1]  ;;  %s337_s5 = scalar_lea.vmem [#allocation4], %s488_s21 }
  0x4d   :  { %v338_v44 = vld [vmem:[%s337_s5] sm:$0x1]  ;;  %s342_s6 = scalar_lea.vmem [#allocation4], %s489_s22 }
  0x4e   :  { %v313_v43 = vadd.f32 %v312_v36, %v308_v38  ;;  %v334_v45 = vadd.f32 %v333_v42, %v329_v41  ;;  %v343_v47 = vld [vmem:[%s342_s6] sm:$0x1]  ;;  %s347_s9 = scalar_lea.vmem [#allocation4], %s490_s27 }
  0x4f   :  { %v348_v49 = vld [vmem:[%s347_s9] sm:$0x1]  ;;  %s352_s10 = scalar_lea.vmem [#allocation4], %s491_s28 }
  0x50   :  { %v318_v46 = vadd.f32 %v317_v40, %v313_v43  ;;  %v339_v48 = vadd.f32 %v338_v44, %v334_v45  ;;  %v353_v51 = vld [vmem:[%s352_s10] sm:$0x1]  ;;  %s357_s11 = scalar_lea.vmem [#allocation4], %s492_s30 }
  0x51   :  { %v358_v53 = vld [vmem:[%s357_s11] sm:$0x1] }
  0x52   :  { %319 = vst [vmem:[%s636_s2 + $0x6] sm:$0x1] %v318_v46  ;;  %v344_v50 = vadd.f32 %v343_v47, %v339_v48 }
  0x54   :  { %v349_v52 = vadd.f32 %v348_v49, %v344_v50 }
  0x56   :  { %v354_v54 = vadd.f32 %v353_v51, %v349_v52 }
  0x58   :  { %v359_v55 = vadd.f32 %v358_v53, %v354_v54 }
  0x5a   :  { %360 = vst [vmem:[%s636_s2 + $0x7] sm:$0x1] %v359_v55 }
  0x5b   :  { %365 = vsyncpa [#allocation5], 1 }

</bundles_post_ra>
